<compile_context>
chip_gen: v7x
topology: tpu7x:2x2x1
jax: 0.10.0
libtpu: 0.0.40
codegen_flags: <defaults>
</compile_context>

<pallas_src>
import jax
import jax.numpy as jnp
from jax.experimental import pallas as pl
from jax.experimental.pallas import tpu as pltpu


def _leaky_relu(y, slope):
    return jnp.where(y >= 0, y, slope * y)


def _make_fused_kernel(n_deconv, couts, slope):
    """Kernel ref layout: x, w0, b0, (a4_i, b_i) * n_deconv, o."""

    def kernel(*refs):
        x_ref = refs[0]
        w0_ref, b0_ref = refs[1], refs[2]
        o_ref = refs[-1]

        # Stage 0: 1x1 conv, channels-first (C on sublanes, batch*H*W on lanes).
        x = x_ref[0]                                                # (Cin0, L0)
        y = jnp.dot(w0_ref[...], x, preferred_element_type=jnp.float32)
        y = _leaky_relu(y + b0_ref[...], slope)                     # (C0, L0)

        # Deconv stages: one fused tap matmul (4*Cout rows), then the 4 tap blocks are
        # laid side by side along the lane axis (spatial interleave deferred to wrapper).
        for i in range(n_deconv):
            a4_ref = refs[3 + 2 * i]                                # (4*Cout, Cin)
            b_ref = refs[4 + 2 * i]                                 # (Cout, 1)
            cout = couts[i]
            yt = jnp.dot(a4_ref[...], y, preferred_element_type=jnp.float32)   # (4*Cout, L)
            y = jnp.concatenate(
                [yt[t * cout:(t + 1) * cout, :] for t in range(4)], axis=1)    # (Cout, 4L)
            y = _leaky_relu(y + b_ref[...], slope)

        o_ref[0] = y.astype(o_ref.dtype)

    return kernel


def init_decoder_params(key, n_channels, channels):
    """Deterministic synthetic params matching the PyTorch module's shapes."""
    rev = list(channels)[::-1]
    in_ch = rev
    out_ch = rev[1:] + [n_channels]
    params = []
    for i, (ci, co) in enumerate(zip(in_ch, out_ch)):
        key, k1, k2 = jax.random.split(key, 3)
        if i == 0:
            w = jax.random.uniform(k1, (co, ci, 1, 1), jnp.float32, -0.1, 0.1)   # Conv2d 1x1
        else:
            w = jax.random.uniform(k1, (ci, co, 2, 2), jnp.float32, -0.1, 0.1)   # ConvTranspose2d
        b = jax.random.uniform(k2, (co,), jnp.float32, -0.1, 0.1)
        params.append((w, b))
    return params


def prepare_decoder(params):
    """One-time relayout of PyTorch-shaped params (no scatter matrices anymore)."""
    w_c, b_c = params[0]
    cout0, cin0 = w_c.shape[0], w_c.shape[1]
    prep = {"w0": w_c.reshape(cout0, cin0),          # (Cout0, Cin0)
            "b0": b_c.reshape(cout0, 1),
            "deconv": []}
    for w_t, b_t in params[1:]:
        cin, cout = w_t.shape[0], w_t.shape[1]
        # a4[t*Cout + co, ci] = W[ci, co, dh, dw] with tap index t = 2*dh + dw.
        a4 = jnp.transpose(w_t, (2, 3, 1, 0)).reshape(4 * cout, cin)
        prep["deconv"].append((a4, b_t.reshape(cout, 1)))
    return prep


def decoder_block_forward(x_nchw, prep, slope=0.01):
    n, cin0, h0, w0 = x_nchw.shape
    p0 = h0 * w0
    bps = 2 if (n % 2 == 0 and n >= 2) else 1        # batch elems folded into the lane axis
    g = n // bps

    # (N, C, H, W) -> (G, C, bps*H*W): lane index = b_local*H*W + h*W + w (tiny transpose).
    x = (x_nchw.reshape(g, bps, cin0, p0)
               .transpose(0, 2, 1, 3)
               .reshape(g, cin0, bps * p0))

    w0_m, b0_m = prep["w0"], prep["b0"]
    deconv = prep["deconv"]
    n_dec = len(deconv)
    couts = [b.shape[0] for _, b in deconv]
    cf = couts[-1] if n_dec else w0_m.shape[0]
    lf = (4 ** n_dec) * bps * p0

    def full_spec(arr):
        nd = arr.ndim
        return pl.BlockSpec(arr.shape, lambda i, nd=nd: (0,) * nd)

    in_specs = [pl.BlockSpec((1, cin0, bps * p0), lambda i: (i, 0, 0)),
                full_spec(w0_m), full_spec(b0_m)]
    inputs = [x, w0_m, b0_m]
    for a4, b in deconv:
        in_specs += [full_spec(a4), full_spec(b)]
        inputs += [a4, b]

    # Advisory cost estimate (real work only; no scatter FLOPs).
    flops = 2 * w0_m.shape[0] * cin0 * bps * p0
    l = bps * p0
    for a4, _ in deconv:
        flops += 2 * a4.shape[0] * a4.shape[1] * l
        l *= 4
    flops *= g
    param_bytes = sum(int(a.size) * a.dtype.itemsize for a in inputs[1:])
    bytes_accessed = int(x.size) * 4 + param_bytes + g * cf * lf * 4

    out = pl.pallas_call(
        _make_fused_kernel(n_dec, couts, slope),
        out_shape=jax.ShapeDtypeStruct((g, cf, lf), x.dtype),
        grid=(g,),
        in_specs=in_specs,
        out_specs=pl.BlockSpec((1, cf, lf), lambda i: (i, 0, 0)),
        compiler_params=pltpu.CompilerParams(
            dimension_semantics=("parallel",)),
        cost_estimate=pl.CostEstimate(flops=flops, transcendentals=0,
                                      bytes_accessed=bytes_accessed),
    )(*inputs)

    # Undo the deferred interleave.  Lane index of `out` decomposes (most significant
    # first) as (t_n, ..., t_1, b_local, h, w) with t_i = 2*dh_i + dw_i, and the final
    # spatial position is H = 2^n*h + sum_i 2^(n-i)*dh_i (same for W with dw_i).
    dims = [g, cf] + [2, 2] * n_dec + [bps, h0, w0]
    y = out.reshape(dims)
    bps_ax, h_ax, w_ax = 2 + 2 * n_dec, 3 + 2 * n_dec, 4 + 2 * n_dec
    dh_axes = [2 + 2 * (n_dec - i) for i in range(1, n_dec + 1)]   # dh_1 ... dh_n
    dw_axes = [3 + 2 * (n_dec - i) for i in range(1, n_dec + 1)]   # dw_1 ... dw_n
    perm = [0, bps_ax, 1, h_ax] + dh_axes + [w_ax] + dw_axes
    y = jnp.transpose(y, perm)
    hf, wf = h0 * (2 ** n_dec), w0 * (2 ** n_dec)
    return y.reshape(n, cf, hf, wf)


def reference_forward(x_nchw, params, slope=0.01):
    """Pure-jnp reference for correctness check."""
    x = jnp.transpose(x_nchw, (0, 2, 3, 1))
    for i, (wt, b) in enumerate(params):
        nb, h, w, cin = x.shape
        if i == 0:
            y = jnp.einsum('nhwi,oi->nhwo', x, wt[:, :, 0, 0]) + b
        else:
            cout = wt.shape[1]
            y = jnp.einsum('nhwi,iodk->nhwdko', x, wt) + b
            y = jnp.transpose(y.reshape(nb, h, w, 2, 2, cout), (0, 1, 3, 2, 4, 5))
            y = y.reshape(nb, 2 * h, 2 * w, cout)
        x = jnp.where(y >= 0, y, slope * y)
    return jnp.transpose(x, (0, 3, 1, 2))


if __name__ == "__main__":
    n_channels = 4
    channels = [8, 16, 32]          # reversed -> in_channels [32,16,8], out_channels [16,8,4]
    key = jax.random.PRNGKey(0)
    kx, kp = jax.random.split(key)
    x = jax.random.normal(kx, (2, 32, 8, 8), jnp.float32)   # NCHW, in_channels[0]=32

    params = init_decoder_params(kp, n_channels, channels)
    prep = prepare_decoder(params)                           # one-time param relayout

    fwd = jax.jit(decoder_block_forward)
    out = jax.block_until_ready(fwd(x, prep))
    assert out.shape == (2, n_channels, 32, 32), out.shape

    ref = jax.block_until_ready(reference_forward(x, params))
    assert jnp.allclose(out, ref, atol=1e-4, rtol=1e-4), float(jnp.max(jnp.abs(out - ref)))

    print("KERNEL_OK")
</pallas_src>

<mosaic_0001>
module attributes {stable_mosaic.version = 11 : i64} {
  func.func @kernel(%arg0: i32, %arg1: memref<1x32x128xf32, #tpu.memory_space<vmem>>, %arg2: memref<16x32xf32, #tpu.memory_space<vmem>>, %arg3: memref<16x1xf32, #tpu.memory_space<vmem>>, %arg4: memref<32x16xf32, #tpu.memory_space<vmem>>, %arg5: memref<8x1xf32, #tpu.memory_space<vmem>>, %arg6: memref<16x8xf32, #tpu.memory_space<vmem>>, %arg7: memref<4x1xf32, #tpu.memory_space<vmem>>, %arg8: memref<1x4x2048xf32, #tpu.memory_space<vmem>>) attributes {dimension_semantics = [#tpu.dimension_semantics<parallel>], iteration_bounds = array<i64: 1>, scalar_prefetch = 0 : i64, scratch_operands = 0 : i64, tpu.core_type = #tpu.core_type<tc>, window_params = [{transform_indices = @transform_0, window_bounds = array<i64: 1, 32, 128>}, {pipeline_mode = #tpu.pipeline_mode<synchronous>, transform_indices = @transform_1, window_bounds = array<i64: 16, 32>}, {pipeline_mode = #tpu.pipeline_mode<synchronous>, transform_indices = @transform_2, window_bounds = array<i64: 16, 1>}, {pipeline_mode = #tpu.pipeline_mode<synchronous>, transform_indices = @transform_3, window_bounds = array<i64: 32, 16>}, {pipeline_mode = #tpu.pipeline_mode<synchronous>, transform_indices = @transform_4, window_bounds = array<i64: 8, 1>}, {pipeline_mode = #tpu.pipeline_mode<synchronous>, transform_indices = @transform_5, window_bounds = array<i64: 16, 8>}, {pipeline_mode = #tpu.pipeline_mode<synchronous>, transform_indices = @transform_6, window_bounds = array<i64: 4, 1>}, {transform_indices = @transform_7, window_bounds = array<i64: 1, 4, 2048>}]} {
    %c0 = arith.constant 0 : index
    %c0_0 = arith.constant 0 : index
    %c0_1 = arith.constant 0 : index
    %0 = vector.load %arg1[%c0, %c0_0, %c0_1] : memref<1x32x128xf32, #tpu.memory_space<vmem>>, vector<1x32x128xf32>
    %1 = vector.shape_cast %0 : vector<1x32x128xf32> to vector<32x128xf32>
    %c0_2 = arith.constant 0 : index
    %c0_3 = arith.constant 0 : index
    %2 = vector.load %arg2[%c0_2, %c0_3] : memref<16x32xf32, #tpu.memory_space<vmem>>, vector<16x32xf32>
    %cst = arith.constant dense<0.000000e+00> : vector<16x128xf32>
    %3 = tpu.matmul %2, %1, %cst {dimension_numbers = #tpu.dot_dimension_numbers<[1], [0], [0], [1], [0, 0, 1, 1], [], []>} : vector<16x32xf32>, vector<32x128xf32>, vector<16x128xf32> -> vector<16x128xf32>
    %c0_4 = arith.constant 0 : index
    %c0_5 = arith.constant 0 : index
    %4 = vector.load %arg3[%c0_4, %c0_5] : memref<16x1xf32, #tpu.memory_space<vmem>>, vector<16x1xf32>
    %5 = vector.broadcast %4 : vector<16x1xf32> to vector<16x128xf32>
    %6 = arith.addf %3, %5 : vector<16x128xf32>
    %cst_6 = arith.constant 0.000000e+00 : f32
    %7 = vector.broadcast %cst_6 : f32 to vector<16x128xf32>
    %8 = arith.cmpf oge, %6, %7 : vector<16x128xf32>
    %cst_7 = arith.constant 0.00999999977 : f32
    %9 = vector.broadcast %cst_7 : f32 to vector<16x128xf32>
    %10 = arith.mulf %9, %6 : vector<16x128xf32>
    %11 = arith.select %8, %6, %10 : vector<16x128xi1>, vector<16x128xf32>
    %c0_8 = arith.constant 0 : index
    %c0_9 = arith.constant 0 : index
    %12 = vector.load %arg4[%c0_8, %c0_9] : memref<32x16xf32, #tpu.memory_space<vmem>>, vector<32x16xf32>
    %cst_10 = arith.constant dense<0.000000e+00> : vector<32x128xf32>
    %13 = tpu.matmul %12, %11, %cst_10 {dimension_numbers = #tpu.dot_dimension_numbers<[1], [0], [0], [1], [0, 0, 1, 1], [], []>} : vector<32x16xf32>, vector<16x128xf32>, vector<32x128xf32> -> vector<32x128xf32>
    %14 = vector.extract_strided_slice %13 {offsets = [0, 0], sizes = [8, 128], strides = [1, 1]} : vector<32x128xf32> to vector<8x128xf32>
    %15 = vector.extract_strided_slice %13 {offsets = [8, 0], sizes = [8, 128], strides = [1, 1]} : vector<32x128xf32> to vector<8x128xf32>
    %16 = vector.extract_strided_slice %13 {offsets = [16, 0], sizes = [8, 128], strides = [1, 1]} : vector<32x128xf32> to vector<8x128xf32>
    %17 = vector.extract_strided_slice %13 {offsets = [24, 0], sizes = [8, 128], strides = [1, 1]} : vector<32x128xf32> to vector<8x128xf32>
    %18 = tpu.concatenate %14, %15, %16, %17 in 1 : vector<8x128xf32>, vector<8x128xf32>, vector<8x128xf32>, vector<8x128xf32> -> vector<8x512xf32>
    %c0_11 = arith.constant 0 : index
    %c0_12 = arith.constant 0 : index
    %19 = vector.load %arg5[%c0_11, %c0_12] : memref<8x1xf32, #tpu.memory_space<vmem>>, vector<8x1xf32>
    %20 = vector.broadcast %19 : vector<8x1xf32> to vector<8x512xf32>
    %21 = arith.addf %18, %20 : vector<8x512xf32>
    %cst_13 = arith.constant 0.000000e+00 : f32
    %22 = vector.broadcast %cst_13 : f32 to vector<8x512xf32>
    %23 = arith.cmpf oge, %21, %22 : vector<8x512xf32>
    %cst_14 = arith.constant 0.00999999977 : f32
    %24 = vector.broadcast %cst_14 : f32 to vector<8x512xf32>
    %25 = arith.mulf %24, %21 : vector<8x512xf32>
    %26 = arith.select %23, %21, %25 : vector<8x512xi1>, vector<8x512xf32>
    %c0_15 = arith.constant 0 : index
    %c0_16 = arith.constant 0 : index
    %27 = vector.load %arg6[%c0_15, %c0_16] : memref<16x8xf32, #tpu.memory_space<vmem>>, vector<16x8xf32>
    %cst_17 = arith.constant dense<0.000000e+00> : vector<16x512xf32>
    %28 = tpu.matmul %27, %26, %cst_17 {dimension_numbers = #tpu.dot_dimension_numbers<[1], [0], [0], [1], [0, 0, 1, 1], [], []>} : vector<16x8xf32>, vector<8x512xf32>, vector<16x512xf32> -> vector<16x512xf32>
    %29 = vector.extract_strided_slice %28 {offsets = [0, 0], sizes = [4, 512], strides = [1, 1]} : vector<16x512xf32> to vector<4x512xf32>
    %30 = vector.extract_strided_slice %28 {offsets = [4, 0], sizes = [4, 512], strides = [1, 1]} : vector<16x512xf32> to vector<4x512xf32>
    %31 = vector.extract_strided_slice %28 {offsets = [8, 0], sizes = [4, 512], strides = [1, 1]} : vector<16x512xf32> to vector<4x512xf32>
    %32 = vector.extract_strided_slice %28 {offsets = [12, 0], sizes = [4, 512], strides = [1, 1]} : vector<16x512xf32> to vector<4x512xf32>
    %33 = tpu.concatenate %29, %30, %31, %32 in 1 : vector<4x512xf32>, vector<4x512xf32>, vector<4x512xf32>, vector<4x512xf32> -> vector<4x2048xf32>
    %c0_18 = arith.constant 0 : index
    %c0_19 = arith.constant 0 : index
    %34 = vector.load %arg7[%c0_18, %c0_19] : memref<4x1xf32, #tpu.memory_space<vmem>>, vector<4x1xf32>
    %35 = vector.broadcast %34 : vector<4x1xf32> to vector<4x2048xf32>
    %36 = arith.addf %33, %35 : vector<4x2048xf32>
    %cst_20 = arith.constant 0.000000e+00 : f32
    %37 = vector.broadcast %cst_20 : f32 to vector<4x2048xf32>
    %38 = arith.cmpf oge, %36, %37 : vector<4x2048xf32>
    %cst_21 = arith.constant 0.00999999977 : f32
    %39 = vector.broadcast %cst_21 : f32 to vector<4x2048xf32>
    %40 = arith.mulf %39, %36 : vector<4x2048xf32>
    %41 = arith.select %38, %36, %40 : vector<4x2048xi1>, vector<4x2048xf32>
    %c0_22 = arith.constant 0 : index
    %c0_23 = arith.constant 0 : index
    %c0_24 = arith.constant 0 : index
    %42 = vector.load %arg8[%c0_22, %c0_23, %c0_24] : memref<1x4x2048xf32, #tpu.memory_space<vmem>>, vector<1x4x2048xf32>
    %43 = vector.shape_cast %42 : vector<1x4x2048xf32> to vector<4x2048xf32>
    %44 = vector.shape_cast %41 : vector<4x2048xf32> to vector<1x4x2048xf32>
    tpu.vector_store %arg8[%c0_22, %c0_23, %c0_24], %44 {strides = array<i32>} : memref<1x4x2048xf32, #tpu.memory_space<vmem>>, vector<1x4x2048xf32>,
    return
  }
  func.func @transform_0(%arg0: i32) -> (i32, i32, i32) {
    %c0_i32 = arith.constant 0 : i32
    %c0_i32_0 = arith.constant 0 : i32
    %c0_i32_1 = arith.constant 0 : i32
    return %arg0, %c0_i32, %c0_i32_0 : i32, i32, i32
  }
  func.func @transform_1(%arg0: i32) -> (i32, i32) {
    %c0_i32 = arith.constant 0 : i32
    %c0_i32_0 = arith.constant 0 : i32
    %c0_i32_1 = arith.constant 0 : i32
    return %c0_i32, %c0_i32_0 : i32, i32
  }
  func.func @transform_2(%arg0: i32) -> (i32, i32) {
    %c0_i32 = arith.constant 0 : i32
    %c0_i32_0 = arith.constant 0 : i32
    %c0_i32_1 = arith.constant 0 : i32
    return %c0_i32, %c0_i32_0 : i32, i32
  }
  func.func @transform_3(%arg0: i32) -> (i32, i32) {
    %c0_i32 = arith.constant 0 : i32
    %c0_i32_0 = arith.constant 0 : i32
    %c0_i32_1 = arith.constant 0 : i32
    return %c0_i32, %c0_i32_0 : i32, i32
  }
  func.func @transform_4(%arg0: i32) -> (i32, i32) {
    %c0_i32 = arith.constant 0 : i32
    %c0_i32_0 = arith.constant 0 : i32
    %c0_i32_1 = arith.constant 0 : i32
    return %c0_i32, %c0_i32_0 : i32, i32
  }
  func.func @transform_5(%arg0: i32) -> (i32, i32) {
    %c0_i32 = arith.constant 0 : i32
    %c0_i32_0 = arith.constant 0 : i32
    %c0_i32_1 = arith.constant 0 : i32
    return %c0_i32, %c0_i32_0 : i32, i32
  }
  func.func @transform_6(%arg0: i32) -> (i32, i32) {
    %c0_i32 = arith.constant 0 : i32
    %c0_i32_0 = arith.constant 0 : i32
    %c0_i32_1 = arith.constant 0 : i32
    return %c0_i32, %c0_i32_0 : i32, i32
  }
  func.func @transform_7(%arg0: i32) -> (i32, i32, i32) {
    %c0_i32 = arith.constant 0 : i32
    %c0_i32_0 = arith.constant 0 : i32
    %c0_i32_1 = arith.constant 0 : i32
    return %arg0, %c0_i32, %c0_i32_0 : i32, i32, i32
  }
}

</mosaic_0001>

<bundles_post_ra>
// kernel: decoder_block_forward.1
= control target key start
LH: loop header
LB: loop body
LE: loop exit
PB: predicated region body
PF: predicated region fallthrough
CT: control target
= control target key end

     0   :  { %vm44_vm0 = vcmask 261120   ;;  %v616_v3 = vmov 0   ;;  %vm136_vm1 = vcmask 130048   ;;  %v617_v28 = vmov 0.0   ;;  %s758_s0 = inlined_call_operand.vmem [shape: f32[1,32,128], index: 0, kind: input, shape index: {}]   ;;  %s759_s1 = inlined_call_operand.vmem [shape: f32[16,32], index: 1, kind: input, shape index: {}]   ;;  %s760_s2 = inlined_call_operand.vmem [shape: f32[16,1], index: 2, kind: input, shape index: {}]   ;;  %s761_s3 = inlined_call_operand.vmem [shape: f32[32,16], index: 3, kind: input, shape index: {}]   ;;  %s762_s4 = inlined_call_operand.vmem [shape: f32[8,1], index: 4, kind: input, shape index: {}]   ;;  %s763_s6 = inlined_call_operand.vmem [shape: f32[4,1], index: 6, kind: input, shape index: {}]   ;;  %s764_s5 = inlined_call_operand.vmem [shape: f32[16,8], index: 5, kind: input, shape index: {}]   ;;  %s765_s7 = inlined_call_operand.vmem [shape: f32[1,4,2048], index: 7, kind: output, shape index: {}]  }
   0x1   :  { %v26_v0 = vld [vmem:[%s758_s0] sm:$0xff]  ;;  %v27_v1 = vld [vmem:[%s758_s0 + $0x8] sm:$0xff]  ;;  %v28_v2 = vld [vmem:[%s758_s0 + $0x10] sm:$0xff]  ;;  %614 = vset.pattern.permute.xlu0 %v616_v3  ;;  %615 = vset.pattern.permute.xlu1 %v616_v3  ;;  %vm258_vm6 = vcmask 64512  }
   0x2   :  { %v600_v4 = vpack.c.bf16 %v27_v1, %v26_v0  ;;  %v29_v5 = vld [vmem:[%s758_s0 + $0x18] sm:$0xff]  ;;  %v30_v6 = vld [vmem:[%s759_s1] sm:$0xff]  ;;  %v33_v9 = vld [vmem:[%s760_s2 + $0x8] sm:$0xff] }
   0x3   :  { %v604_v7 = vpack.c.bf16 %v29_v5, %v28_v2  ;;  %587 = vmatprep.mubr.msk.f32.mxu0 %vm44_vm0, %v30_v6  ;;  %v32_v8 = vld [vmem:[%s760_s2] sm:$0xff]  ;;  %v31_v10 = vld [vmem:[%s759_s1 + $0x8] sm:$0xff]  ;;  %v134_v26 = vld [vmem:[%s761_s3 + $0x10] sm:$0xff] }
   0x4   :  { %601 = vmatprep.subr.bf16.mxu0 %v600_v4  ;;  %36 = vperm.xlu0 %614, %v32_v8   ;;  %v132_v11 = vld [vmem:[%s761_s3] sm:$0xff]  ;;  %v133_v25 = vld [vmem:[%s761_s3 + $0x8] sm:$0xff]  ;;  %v135_v27 = vld [vmem:[%s761_s3 + $0x18] sm:$0xff] }
   0x5   :  { %603 = vmatpush3.bf16.msra.mxu0 %v600_v4  ;;  %594 = vmatprep.mubr.msk.f32.mxu1 %vm136_vm1, %v132_v11  ;;  %v234_v12 = vld [vmem:[%s762_s4] sm:$0xff]  ;;  %v257_v46 = vld [vmem:[%s764_s5 + $0x8] sm:$0xff] }
   0x6   :  { %605 = vmatprep.subr.bf16.mxu0 %v604_v7  ;;  %237 = vperm.xlu1 %615, %v234_v12   ;;  %v443_v13 = vld [vmem:[%s763_s6] sm:$0xf] }
   0x7   :  { %v256_v40 = vld [vmem:[%s764_s5] sm:$0xff] }
   0x8   :  { %41 = vperm.xlu0 %614, %v33_v9  }
   0x9   :  { %607 = vmatpush3.bf16.msra.mxu0 %v604_v7 }
   0xa   :  { %446 = vperm.xlu1 %615, %v443_v13  }
   0xc   :  { %588 = vmatmul.mubr.msk.f32.vlgmr.msra.gmra.mrb[0].mxu0 %vm44_vm0, %v31_v10 }
   0xd   :  { %329 = vmatprep.mubr.f32.mxu0 %v617_v28 }
  0x83   :  { %v37_v14 = vpop.permute.xlu0 %36 }
  0x85   :  { %v238_v29 = vpop.permute.xlu1 %237 }
  0x87   :  { %v42_v15 = vpop.permute.xlu0 %41 }
  0x89   :  { %v716_v48 = vpop.permute.xlu1 %446 }
  0xdf   :  { %v589_v16 = vpop.f32.mrb[0].mxu0 }
  0xe0   :  { %v123_v17 = vadd.f32 %v589_v16, %v42_v15  ;;  %v117_v18 = vpop.f32.mrb[1].mxu0 }
  0xe1   :  { %v118_v19 = vadd.f32 %v117_v18, %v37_v14 }
  0xe2   :  { %v129_v20 = vmul.f32 0.01, %v123_v17  ;;  %vm127_vm2 = vcmp.ge.f32.partialorder %v123_v17, 0.0 }
  0xe3   :  { %v128_v21 = vmul.f32 0.01, %v118_v19  ;;  %vm126_vm3 = vcmp.ge.f32.partialorder %v118_v19, 0.0 }
  0xe4   :  { %v131_v22 = vsel %vm127_vm2, %v123_v17, %v129_v20 }
  0xe5   :  { %v130_v23 = vsel %vm126_vm3, %v118_v19, %v128_v21 }
  0xe6   :  { %v608_v24 = vpack.c.bf16 %v131_v22, %v130_v23 }
  0xe8   :  { %609 = vmatprep.subr.bf16.mxu1 %v608_v24 }
  0xe9   :  { %611 = vmatpush3.bf16.msra.mxu1 %v608_v24 }
  0xec   :  { %595 = vmatmul.mubr.msk.f32.vlgmr.msra.gmra.mrb[0].mxu1 %vm136_vm1, %v133_v25 }
  0xed   :  { %597 = vmatprep.mubr.msk.f32.mxu1 %vm136_vm1, %v134_v26 }
  0xf0   :  { %598 = vmatmul.mubr.msk.f32.gmra.mrb[2].mxu1 %vm136_vm1, %v135_v27 }
  0xf1   :  { %406 = vmatprep.mubr.f32.mxu1 %v617_v28 }
 0x1bf   :  { %v596_v30 = vpop.f32.mrb[0].mxu1 }
 0x1c0   :  { %v241_v31 = vadd.f32 %v596_v30, %v238_v29  ;;  %v215_v32 = vpop.f32.mrb[1].mxu1 }
 0x1c1   :  { %v240_v33 = vadd.f32 %v238_v29, %v215_v32 }
 0x1c2   :  { %v249_v34 = vmul.f32 0.01, %v241_v31  ;;  %vm245_vm4 = vcmp.ge.f32.partialorder %v241_v31, 0.0 }
 0x1c3   :  { %vm244_vm5 = vcmp.ge.f32.partialorder %v240_v33, 0.0  ;;  %v248_v35 = vmul.f32 0.01, %v240_v33  ;;  %v599_v36 = vpop.f32.mrb[2].mxu1 }
 0x1c4   :  { %v243_v37 = vadd.f32 %v599_v36, %v238_v29  ;;  %v225_v38 = vpop.f32.mrb[3].mxu1  ;;  %v253_v39 = vsel %vm245_vm4, %v241_v31, %v249_v34 }
 0x1c5   :  { %v242_v41 = vadd.f32 %v238_v29, %v225_v38  ;;  %265 = vmatprep.subr.mxu0 %v253_v39  ;;  %v252_v42 = vsel %vm244_vm5, %v240_v33, %v248_v35 }
 0x1c6   :  { %v251_v43 = vmul.f32 0.01, %v243_v37  ;;  %266 = vmatpush1.msra.mxu0 %v252_v42  ;;  %vm247_vm7 = vcmp.ge.f32.partialorder %v243_v37, 0.0 }
 0x1c7   :  { %vm246_vm8 = vcmp.ge.f32.partialorder %v242_v41, 0.0  ;;  %v250_v44 = vmul.f32 0.01, %v242_v41  ;;  %563 = vmatmul.mubr.msk.f32.vlgmr.msra.gmra.mrb[2].mxu0 %vm258_vm6, %v256_v40 }
 0x1c8   :  { %v255_v45 = vsel %vm247_vm7, %v243_v37, %v251_v43  ;;  %335 = vmatprep.mubr.f32.mxu0 %v617_v28 }
 0x1c9   :  { %342 = vmatprep.subr.mxu1 %v255_v45  ;;  %v254_v47 = vsel %vm246_vm8, %v242_v41, %v250_v44 }
 0x1ca   :  { %343 = vmatpush1.msra.mxu1 %v254_v47 }
 0x1cb   :  { %564 = vmatmul.mubr.msk.f32.gmra.mrb[4].mxu0 %vm258_vm6, %v257_v46  ;;  %565 = vmatmul.mubr.msk.f32.vlgmr.msra.gmra.mrb[4].mxu1 %vm258_vm6, %v256_v40 }
 0x1cc   :  { %412 = vmatprep.mubr.f32.mxu1 %v617_v28 }
 0x1cf   :  { %566 = vmatmul.mubr.msk.f32.gmra.mrb[6].mxu1 %vm258_vm6, %v257_v46 }
 0x29a   :  { %v331_v49 = vpop.f32.mrb[2].mxu0 }
 0x29b   :  { %v423_v50 = vrot.slane %v331_v49, 4  ;;  %v449_v51 = vadd.f32 %v716_v48, %v331_v49  ;;  %v333_v52 = vpop.f32.mrb[3].mxu0 }
 0x29c   :  { %v424_v53 = vrot.slane %v333_v52, 4  ;;  %v450_v54 = vadd.f32 %v716_v48, %v333_v52 }
 0x29d   :  { %v453_v55 = vadd.f32 %v716_v48, %v423_v50  ;;  %vm465_vm9 = vcmp.ge.f32.partialorder %v449_v51, 0.0  ;;  %v481_v56 = vmul.f32 0.01, %v449_v51 }
 0x29e   :  { %v454_v57 = vadd.f32 %v716_v48, %v424_v53  ;;  %vm466_vm10 = vcmp.ge.f32.partialorder %v450_v54, 0.0  ;;  %v482_v58 = vmul.f32 0.01, %v450_v54  ;;  %v337_v59 = vpop.f32.mrb[4].mxu0  ;;  %v408_v60 = vpop.f32.mrb[4].mxu1 }
 0x29f   :  { %vm469_vm11 = vcmp.ge.f32.partialorder %v453_v55, 0.0  ;;  %v485_v61 = vmul.f32 0.01, %v453_v55  ;;  %v497_v62 = vsel %vm465_vm9, %v449_v51, %v481_v56  ;;  %v435_v63 = vrot.slane %v337_v59, 4  ;;  %v339_v0 = vpop.f32.mrb[5].mxu0  ;;  %v410_v1 = vpop.f32.mrb[5].mxu1 }
 0x2a0   :  { %vm470_vm12 = vcmp.ge.f32.partialorder %v454_v57, 0.0  ;;  %v486_v2 = vmul.f32 0.01, %v454_v57  ;;  %v498_v3 = vsel %vm466_vm10, %v450_v54, %v482_v58  ;;  %v457_v4 = vadd.f32 %v716_v48, %v337_v59 }
 0x2a1   :  { %v501_v5 = vsel %vm469_vm11, %v453_v55, %v485_v61  ;;  %v529_v6 = vcombine.low %v497_v62, %v498_v3  ;;  %v461_v7 = vadd.f32 %v716_v48, %v435_v63  ;;  %v425_v8 = vrot.slane %v408_v60, 4 }
 0x2a2   :  { %v502_v9 = vsel %vm470_vm12, %v454_v57, %v486_v2  ;;  %vm473_vm13 = vcmp.ge.f32.partialorder %v457_v4, 0.0  ;;  %v489_v10 = vmul.f32 0.01, %v457_v4  ;;  %v451_v11 = vadd.f32 %v716_v48, %v408_v60  ;;  %v414_v12 = vpop.f32.mrb[6].mxu1 }
 0x2a3   :  { %v531_v13 = vcombine.low %v501_v5, %v502_v9  ;;  %545 = vst [vmem:[%s765_s7] sm:$0xff] %v529_v6  ;;  %vm477_vm14 = vcmp.ge.f32.partialorder %v461_v7, 0.0  ;;  %v493_v14 = vmul.f32 0.01, %v461_v7  ;;  %v455_v15 = vadd.f32 %v716_v48, %v425_v8  ;;  %v416_v16 = vpop.f32.mrb[7].mxu1 }
 0x2a4   :  { %v505_v17 = vsel %vm473_vm13, %v457_v4, %v489_v10  ;;  %vm467_vm15 = vcmp.ge.f32.partialorder %v451_v11, 0.0  ;;  %v483_v18 = vmul.f32 0.01, %v451_v11  ;;  %v436_v19 = vrot.slane %v339_v0, 4 }
 0x2a5   :  { %547 = vst [vmem:[%s765_s7 + $0x10] sm:$0xff] %v531_v13  ;;  %v509_v20 = vsel %vm477_vm14, %v461_v7, %v493_v14  ;;  %vm471_vm0 = vcmp.ge.f32.partialorder %v455_v15, 0.0  ;;  %v487_v21 = vmul.f32 0.01, %v455_v15  ;;  %v458_v22 = vadd.f32 %v716_v48, %v339_v0 }
 0x2a6   :  { %v499_v23 = vsel %vm467_vm15, %v451_v11, %v483_v18  ;;  %v462_v24 = vadd.f32 %v716_v48, %v436_v19  ;;  %v426_v25 = vrot.slane %v410_v1, 4  ;;  %v452_v26 = vadd.f32 %v716_v48, %v410_v1 }
 0x2a7   :  { %v503_v27 = vsel %vm471_vm0, %v455_v15, %v487_v21  ;;  %vm474_vm1 = vcmp.ge.f32.partialorder %v458_v22, 0.0  ;;  %v490_v28 = vmul.f32 0.01, %v458_v22  ;;  %v437_v29 = vrot.slane %v414_v12, 4 }
 0x2a8   :  { %vm478_vm2 = vcmp.ge.f32.partialorder %v462_v24, 0.0  ;;  %v494_v30 = vmul.f32 0.01, %v462_v24  ;;  %v456_v31 = vadd.f32 %v716_v48, %v426_v25  ;;  %vm468_vm3 = vcmp.ge.f32.partialorder %v452_v26, 0.0 }
 0x2a9   :  { %v506_v32 = vsel %vm474_vm1, %v458_v22, %v490_v28  ;;  %v484_v33 = vmul.f32 0.01, %v452_v26  ;;  %v459_v34 = vadd.f32 %v716_v48, %v414_v12  ;;  %v463_v35 = vadd.f32 %v716_v48, %v437_v29 }
 0x2aa   :  { %v510_v36 = vsel %vm478_vm2, %v462_v24, %v494_v30  ;;  %v533_v37 = vcombine.low %v505_v17, %v506_v32  ;;  %vm472_vm4 = vcmp.ge.f32.partialorder %v456_v31, 0.0  ;;  %v488_v38 = vmul.f32 0.01, %v456_v31 }
 0x2ab   :  { %v535_v39 = vcombine.low %v509_v20, %v510_v36  ;;  %v500_v40 = vsel %vm468_vm3, %v452_v26, %v484_v33  ;;  %vm475_vm5 = vcmp.ge.f32.partialorder %v459_v34, 0.0  ;;  %v491_v43 = vmul.f32 0.01, %v459_v34 }
 0x2ac   :  { %549 = vst [vmem:[%s765_s7 + $0x20] sm:$0xff] %v533_v37  ;;  %v504_v41 = vsel %vm472_vm4, %v456_v31, %v488_v38  ;;  %v530_v42 = vcombine.low %v499_v23, %v500_v40  ;;  %v495_v45 = vmul.f32 0.01, %v463_v35  ;;  %v438_v46 = vrot.slane %v416_v16, 4 }
 0x2ad   :  { %551 = vst [vmem:[%s765_s7 + $0x30] sm:$0xff] %v535_v39  ;;  %v532_v44 = vcombine.low %v503_v27, %v504_v41  ;;  %v460_v47 = vadd.f32 %v716_v48, %v416_v16  ;;  %vm479_vm6 = vcmp.ge.f32.partialorder %v463_v35, 0.0  ;;  %v507_v49 = vsel %vm475_vm5, %v459_v34, %v491_v43 }
 0x2ae   :  { %546 = vst [vmem:[%s765_s7 + $0x8] sm:$0xff] %v530_v42  ;;  %v464_v50 = vadd.f32 %v716_v48, %v438_v46  ;;  %v511_v52 = vsel %vm479_vm6, %v463_v35, %v495_v45 }
 0x2af   :  { %548 = vst [vmem:[%s765_s7 + $0x18] sm:$0xff] %v532_v44  ;;  %vm476_vm7 = vcmp.ge.f32.partialorder %v460_v47, 0.0  ;;  %v492_v51 = vmul.f32 0.01, %v460_v47 }
 0x2b0   :  { %vm480_vm8 = vcmp.ge.f32.partialorder %v464_v50, 0.0  ;;  %v496_v53 = vmul.f32 0.01, %v464_v50 }
 0x2b1   :  { %v508_v54 = vsel %vm476_vm7, %v460_v47, %v492_v51 }
 0x2b2   :  { %v534_v55 = vcombine.low %v507_v49, %v508_v54  ;;  %v512_v56 = vsel %vm480_vm8, %v464_v50, %v496_v53 }
 0x2b3   :  { %v536_v57 = vcombine.low %v511_v52, %v512_v56 }
 0x2b4   :  { %550 = vst [vmem:[%s765_s7 + $0x28] sm:$0xff] %v534_v55 }
 0x2b5   :  { %552 = vst [vmem:[%s765_s7 + $0x38] sm:$0xff] %v536_v57 }

</bundles_post_ra>
